<compile_context>
chip_gen: v7x
topology: tpu7x:2x2x1
jax: 0.10.0
libtpu: 0.0.40
codegen_flags: <defaults>
</compile_context>

<pallas_src>
import math

import jax
import jax.numpy as jnp
from jax.experimental import pallas as pl
from jax.experimental.pallas import tpu as pltpu

# ----- small synthetic config (stand-in for SD-1.x sizes) -----
IMG_SIZE = 32            # image_size (small)
VAE_DOWN = 8             # VAE spatial downsample factor (512 -> 64 in real SD)
LAT_C = 4                # latent channels
HID = 32                 # unet hidden / cross-attention dim
SEQ = 8                  # text sequence length
NUM_TRAIN_TIMESTEPS = 1000
SCALING_FACTOR = 0.18215
NOISE_OFFSET = 0.0       # default in module __init__ -> branch skipped

# packed bf16 MXU-weight block: columns of a single (HID, 6*HID+LAT_C) matrix
OFF_WT1 = 0
OFF_WT2 = HID
OFF_WQ = 2 * HID
OFF_WKV = 3 * HID          # wk | wv fused -> one KV matmul
OFF_WO = 5 * HID
OFF_WOUT = 6 * HID
W_HID_COLS = 6 * HID + LAT_C

# packed f32 misc block (biases, K=4 input projection, loss-transpose identity)
ROW_B_IN = 0
ROW_BT1 = 1
ROW_BT2 = 2
ROW_B_OUT = 3              # first LAT_C columns
ROW_VAE_B = 4              # first 2*LAT_C columns
ROW_W_IN = 8               # rows 8..8+LAT_C
ROW_EYE = 12               # eye(LAT_C) in the first LAT_C columns
W_MISC_ROWS = ROW_EYE + LAT_C


# ----------------------------------------------------------------------------
# Fused kernel: one grid step = one batch element
# ----------------------------------------------------------------------------
def _fused_sd_kernel(sched_ref,                       # SMEM (B, 2)
                     patch_ref, eps_ref, noise_ref, ctx_ref, tsin_ref,
                     vae_w_ref, w_hid_ref, w_misc_ref,
                     loss_ref):
    f32 = jnp.float32
    bf16 = jnp.bfloat16
    b = pl.program_id(0)
    T = patch_ref.shape[0]

    # per-batch DDPM scheduler scalars straight from SMEM
    sqrt_acp = sched_ref[b, 0]
    sqrt_1macp = sched_ref[b, 1]

    # --- 1) image.sub_(0.5).div_(0.5) + VAE encode (patch conv as matmul) ---
    x = patch_ref[...] * 2.0 - 1.0                                    # (T, P)
    vae_b = w_misc_ref[ROW_VAE_B:ROW_VAE_B + 1, 0:2 * LAT_C]
    h_vae = jnp.dot(x.astype(bf16), vae_w_ref[...],
                    preferred_element_type=f32) + vae_b               # (T, 2C)
    mean = h_vae[:, :LAT_C]
    logvar = jnp.clip(h_vae[:, LAT_C:], -30.0, 20.0)   # DiagonalGaussian clamp
    std = jnp.exp(0.5 * logvar)
    latents = (mean + std * eps_ref[...]) * SCALING_FACTOR  # .sample()*scaling

    # --- 2) DDPMScheduler.add_noise ---
    noise = noise_ref[...]                                            # (T, C)
    noisy = sqrt_acp * latents + sqrt_1macp * noise

    # --- 3) stand-in UNet2DConditionModel ---
    # K=4 input projection as LAT_C VPU broadcast-FMAs (K=4 would waste MXU rows)
    w_in = w_misc_ref[ROW_W_IN:ROW_W_IN + LAT_C, :]                   # (C, HID)
    b_in = w_misc_ref[ROW_B_IN:ROW_B_IN + 1, :]
    h = jnp.broadcast_to(b_in, (T, HID))
    for c in range(LAT_C):
        h = h + noisy[:, c:c + 1] * w_in[c:c + 1, :]

    # timestep-embedding MLP on a single (1, HID) row, broadcast-added
    wt1 = w_hid_ref[:, OFF_WT1:OFF_WT1 + HID]
    wt2 = w_hid_ref[:, OFF_WT2:OFF_WT2 + HID]
    bt1 = w_misc_ref[ROW_BT1:ROW_BT1 + 1, :]
    bt2 = w_misc_ref[ROW_BT2:ROW_BT2 + 1, :]
    tsin = tsin_ref[...]                                              # (1, HID)
    t1 = jax.nn.silu(jnp.dot(tsin.astype(bf16), wt1,
                             preferred_element_type=f32) + bt1)
    temb = jnp.dot(t1.astype(bf16), wt2, preferred_element_type=f32) + bt2
    h = h + temb                                          # broadcast over rows

    # cross-attention vs this batch element's text embeddings (no batch mask)
    wq = w_hid_ref[:, OFF_WQ:OFF_WQ + HID]                # 1/sqrt(HID) folded
    wkv = w_hid_ref[:, OFF_WKV:OFF_WKV + 2 * HID]
    wo = w_hid_ref[:, OFF_WO:OFF_WO + HID]
    ctx = ctx_ref[...]                                                # (SEQ, HID)
    q = jnp.dot(h.astype(bf16), wq, preferred_element_type=f32)       # (T, HID)
    kv = jnp.dot(ctx.astype(bf16), wkv, preferred_element_type=f32)   # (SEQ, 2H)
    k = kv[:, :HID]
    v = kv[:, HID:]
    scores = jax.lax.dot_general(q.astype(bf16), k.astype(bf16),
                                 (((1,), (1,)), ((), ())),
                                 preferred_element_type=f32)          # (T, SEQ)
    scores = scores - jnp.max(scores, axis=-1, keepdims=True)
    p = jnp.exp(scores)
    # approx reciprocal (EUP): probabilities sum to ~1, tiny deviation vs torch
    attn = p * pl.reciprocal(jnp.sum(p, axis=-1, keepdims=True), approx=True)
    a = jnp.dot(attn.astype(bf16), v.astype(bf16), preferred_element_type=f32)
    h = h + jnp.dot(a.astype(bf16), wo, preferred_element_type=f32)

    w_out = w_hid_ref[:, OFF_WOUT:OFF_WOUT + LAT_C]
    b_out = w_misc_ref[ROW_B_OUT:ROW_B_OUT + 1, 0:LAT_C]
    pred = jnp.dot(jax.nn.silu(h).astype(bf16), w_out,
                   preferred_element_type=f32) + b_out                # (T, C)

    # --- 4) F.mse_loss(pred, target=noise, reduction='none') ---
    d = pred - noise
    d2 = d * d
    # Emit channel-major (LAT_C, T) so the store is lane-dense and the result
    # reshapes straight to NCHW.  The layout flip is an exact f32 identity
    # matmul on the MXU (q@k.T pattern), avoiding a small-shape XLU transpose.
    eye = w_misc_ref[ROW_EYE:ROW_EYE + LAT_C, 0:LAT_C]
    loss_ref[...] = jax.lax.dot_general(eye, d2, (((1,), (1,)), ((), ())),
                                        preferred_element_type=f32)


# ----------------------------------------------------------------------------
# Scheduler + parameters + full forward
# ----------------------------------------------------------------------------
def make_alphas_cumprod():
    # DDPMScheduler 'scaled_linear' schedule used by Stable Diffusion
    betas = jnp.linspace(0.00085 ** 0.5, 0.012 ** 0.5,
                         NUM_TRAIN_TIMESTEPS, dtype=jnp.float32) ** 2
    alphas = 1.0 - betas
    return jnp.cumprod(alphas)


def sinusoidal_embedding(timesteps, dim):
    # diffusers Timesteps(flip_sin_to_cos=True) ordering: [cos, sin]
    half = dim // 2
    exponent = -math.log(10000.0) * jnp.arange(half, dtype=jnp.float32) / half
    freqs = jnp.exp(exponent)
    args = timesteps.astype(jnp.float32)[:, None] * freqs[None, :]
    return jnp.concatenate([jnp.cos(args), jnp.sin(args)], axis=-1)


def init_params(key):
    keys = jax.random.split(key, 9)
    P = 3 * VAE_DOWN * VAE_DOWN

    def w(k, shape, scale=0.02):
        return scale * jax.random.normal(k, shape, jnp.float32)

    vae_w = w(keys[0], (P, 2 * LAT_C))
    w_in = w(keys[1], (LAT_C, HID))
    wt1 = w(keys[2], (HID, HID))
    wt2 = w(keys[3], (HID, HID))
    # attention scale 1/sqrt(HID) folded into Wq once, at parameter-setup time
    wq = w(keys[4], (HID, HID)) * (1.0 / math.sqrt(HID))
    wk = w(keys[5], (HID, HID))
    wv = w(keys[6], (HID, HID))
    wo = w(keys[7], (HID, HID))
    w_out = w(keys[8], (HID, LAT_C))

    # MXU-bound weights packed into one bf16 block (few large DMAs, f32 accum)
    w_hid = jnp.concatenate([wt1, wt2, wq, wk, wv, wo, w_out], axis=1)

    # VPU-path params stay f32: biases (all zero-init, as in the stand-in net),
    # the K=4 input projection, and the identity used for the loss layout flip.
    w_misc = jnp.zeros((W_MISC_ROWS, HID), jnp.float32)
    w_misc = w_misc.at[ROW_W_IN:ROW_W_IN + LAT_C, :].set(w_in)
    w_misc = w_misc.at[ROW_EYE:ROW_EYE + LAT_C, :LAT_C].set(
        jnp.eye(LAT_C, dtype=jnp.float32))

    return dict(vae_w=vae_w.astype(jnp.bfloat16),
                w_hid=w_hid.astype(jnp.bfloat16),
                w_misc=w_misc)


def stable_diffusion_forward(image, text_embeds, params, alphas_cumprod, rng):
    B, C, H, W = image.shape
    Hp, Wp = H // VAE_DOWN, W // VAE_DOWN
    T = Hp * Wp
    P = C * VAE_DOWN * VAE_DOWN

    eps_key, noise_key, t_key = jax.random.split(rng, 3)

    # API boundary only: NCHW image -> per-batch token-major patch matrix
    patches = image.reshape(B, C, Hp, VAE_DOWN, Wp, VAE_DOWN)
    patches = patches.transpose(0, 2, 4, 1, 3, 5).reshape(B, T, P)

    eps = jax.random.normal(eps_key, (B, T, LAT_C), jnp.float32)
    noise = jax.random.normal(noise_key, (B, T, LAT_C), jnp.float32)
    # NOISE_OFFSET == 0.0 -> offset branch skipped (matches default config)
    timesteps = jax.random.randint(t_key, (B,), 0, NUM_TRAIN_TIMESTEPS)

    acp = alphas_cumprod[timesteps]
    sched = jnp.stack([jnp.sqrt(acp), jnp.sqrt(1.0 - acp)],
                      axis=1).astype(jnp.float32)               # (B, 2) -> SMEM
    temb_sin = sinusoidal_embedding(timesteps, HID).reshape(B, 1, HID)

    loss_cm = pl.pallas_call(
        _fused_sd_kernel,
        out_shape=jax.ShapeDtypeStruct((B, LAT_C, T), jnp.float32),
        grid=(B,),
        in_specs=[
            pl.BlockSpec(memory_space=pltpu.MemorySpace.SMEM),     # sched (B,2)
            pl.BlockSpec((None, T, P), lambda b: (b, 0, 0)),       # patches
            pl.BlockSpec((None, T, LAT_C), lambda b: (b, 0, 0)),   # eps
            pl.BlockSpec((None, T, LAT_C), lambda b: (b, 0, 0)),   # noise
            pl.BlockSpec((None, SEQ, HID), lambda b: (b, 0, 0)),   # text embeds
            pl.BlockSpec((None, 1, HID), lambda b: (b, 0, 0)),     # t sin emb
            # weights: constant index_map -> DMA'd once, VMEM-resident
            pl.BlockSpec((P, 2 * LAT_C), lambda b: (0, 0)),        # vae_w bf16
            pl.BlockSpec((HID, W_HID_COLS), lambda b: (0, 0)),     # w_hid bf16
            pl.BlockSpec((W_MISC_ROWS, HID), lambda b: (0, 0)),    # w_misc f32
        ],
        out_specs=pl.BlockSpec((None, LAT_C, T), lambda b: (b, 0, 0)),
        compiler_params=pltpu.CompilerParams(
            dimension_semantics=("parallel",),     # batch sharded on v7x 2 TCs
            vmem_limit_bytes=32 * 1024 * 1024),
    )(sched, patches, eps, noise, text_embeds, temb_sin,
      params["vae_w"], params["w_hid"], params["w_misc"])

    # prediction_type == 'epsilon' -> target is the noise (handled in-kernel)
    # channel-major kernel output reshapes straight to NCHW (no transpose)
    return loss_cm.reshape(B, LAT_C, Hp, Wp)


# TODO(synk): pretrained VAE/UNet architectures (resnet blocks, group norms,
# self-attn stacks, MMFSNet mmfs_features/mmfs_mask injection) are replaced by
# small stand-in nets; only the forward-pass dataflow and the hot
# matmul/attention/elementwise paths are implemented in the Pallas kernel.
# TODO(synk): at real SD sizes add a second grid axis tiling the token dim
# (256-512 rows on v7x / 512-1024 on v5e-v6e) and re-derive vmem_limit_bytes
# per chip (64 MiB physical VMEM on v7x vs 128 MiB on v5e/v6e).


if __name__ == "__main__":
    key = jax.random.PRNGKey(0)
    pkey, ikey, tkey, fkey = jax.random.split(key, 4)
    B = 2
    image = jax.random.uniform(ikey, (B, 3, IMG_SIZE, IMG_SIZE), jnp.float32)
    text_embeds = jax.random.normal(tkey, (B, SEQ, HID), jnp.float32)
    params = init_params(pkey)
    alphas_cumprod = make_alphas_cumprod()

    fwd = jax.jit(stable_diffusion_forward)
    loss = fwd(image, text_embeds, params, alphas_cumprod, fkey)
    loss = jax.block_until_ready(loss)
    assert loss.shape == (B, LAT_C, IMG_SIZE // VAE_DOWN, IMG_SIZE // VAE_DOWN)
    assert bool(jnp.all(jnp.isfinite(loss)))
    print("KERNEL_OK")
</pallas_src>

<mosaic_0001>
module attributes {stable_mosaic.version = 11 : i64} {
  func.func @_fused_sd_kernel(%arg0: i32, %arg1: memref<2x2xf32, #tpu.memory_space<smem>>, %arg2: memref<1x16x192xf32, #tpu.memory_space<vmem>>, %arg3: memref<1x16x4xf32, #tpu.memory_space<vmem>>, %arg4: memref<1x16x4xf32, #tpu.memory_space<vmem>>, %arg5: memref<1x8x32xf32, #tpu.memory_space<vmem>>, %arg6: memref<1x1x32xf32, #tpu.memory_space<vmem>>, %arg7: memref<192x8xbf16, #tpu.memory_space<vmem>>, %arg8: memref<32x196xbf16, #tpu.memory_space<vmem>>, %arg9: memref<16x32xf32, #tpu.memory_space<vmem>>, %arg10: memref<1x4x16xf32, #tpu.memory_space<vmem>>) attributes {dimension_semantics = [#tpu.dimension_semantics<parallel>], iteration_bounds = array<i64: 2>, scalar_prefetch = 0 : i64, scratch_operands = 0 : i64, tpu.core_type = #tpu.core_type<tc>, window_params = [{transform_indices = @transform_0, window_bounds = array<i64: 2, 2>}, {transform_indices = @transform_1, window_bounds = array<i64: 1, 16, 192>}, {transform_indices = @transform_2, window_bounds = array<i64: 1, 16, 4>}, {transform_indices = @transform_3, window_bounds = array<i64: 1, 16, 4>}, {transform_indices = @transform_4, window_bounds = array<i64: 1, 8, 32>}, {transform_indices = @transform_5, window_bounds = array<i64: 1, 1, 32>}, {pipeline_mode = #tpu.pipeline_mode<synchronous>, transform_indices = @transform_6, window_bounds = array<i64: 192, 8>}, {pipeline_mode = #tpu.pipeline_mode<synchronous>, transform_indices = @transform_7, window_bounds = array<i64: 32, 196>}, {pipeline_mode = #tpu.pipeline_mode<synchronous>, transform_indices = @transform_8, window_bounds = array<i64: 16, 32>}, {transform_indices = @transform_9, window_bounds = array<i64: 1, 4, 16>}]} {
    %0 = arith.index_cast %arg0 : i32 to index
    %c0 = arith.constant 0 : index
    %1 = memref.load %arg1[%0, %c0] : memref<2x2xf32, #tpu.memory_space<smem>>
    %2 = arith.index_cast %arg0 : i32 to index
    %c1 = arith.constant 1 : index
    %3 = memref.load %arg1[%2, %c1] : memref<2x2xf32, #tpu.memory_space<smem>>
    %c0_0 = arith.constant 0 : index
    %c0_1 = arith.constant 0 : index
    %c0_2 = arith.constant 0 : index
    %4 = vector.load %arg2[%c0_0, %c0_1, %c0_2] : memref<1x16x192xf32, #tpu.memory_space<vmem>>, vector<1x16x192xf32>
    %5 = vector.shape_cast %4 : vector<1x16x192xf32> to vector<16x192xf32>
    %cst = arith.constant 2.000000e+00 : f32
    %6 = vector.broadcast %cst : f32 to vector<16x192xf32>
    %7 = arith.mulf %5, %6 : vector<16x192xf32>
    %cst_3 = arith.constant 1.000000e+00 : f32
    %8 = vector.broadcast %cst_3 : f32 to vector<16x192xf32>
    %9 = arith.subf %7, %8 : vector<16x192xf32>
    %c4 = arith.constant 4 : index
    %c0_4 = arith.constant 0 : index
    %10 = vector.load %arg9[%c4, %c0_4] : memref<16x32xf32, #tpu.memory_space<vmem>>, vector<1x8xf32>
    %11 = arith.truncf %9 : vector<16x192xf32> to vector<16x192xbf16>
    %c0_5 = arith.constant 0 : index
    %c0_6 = arith.constant 0 : index
    %12 = vector.load %arg7[%c0_5, %c0_6] : memref<192x8xbf16, #tpu.memory_space<vmem>>, vector<192x8xbf16>
    %cst_7 = arith.constant dense<0.000000e+00> : vector<16x8xf32>
    %13 = tpu.matmul %11, %12, %cst_7 {dimension_numbers = #tpu.dot_dimension_numbers<[1], [0], [0], [1], [0, 0, 1, 1], [], []>} : vector<16x192xbf16>, vector<192x8xbf16>, vector<16x8xf32> -> vector<16x8xf32>
    %14 = vector.broadcast %10 : vector<1x8xf32> to vector<16x8xf32>
    %15 = arith.addf %13, %14 : vector<16x8xf32>
    %16 = vector.extract_strided_slice %15 {offsets = [0, 0], sizes = [16, 4], strides = [1, 1]} : vector<16x8xf32> to vector<16x4xf32>
    %17 = vector.extract_strided_slice %15 {offsets = [0, 4], sizes = [16, 4], strides = [1, 1]} : vector<16x8xf32> to vector<16x4xf32>
    %cst_8 = arith.constant -3.000000e+01 : f32
    %cst_9 = arith.constant 2.000000e+01 : f32
    %18 = vector.broadcast %cst_8 : f32 to vector<16x4xf32>
    %19 = arith.maximumf %18, %17 : vector<16x4xf32>
    %20 = vector.broadcast %cst_9 : f32 to vector<16x4xf32>
    %21 = arith.minimumf %20, %19 : vector<16x4xf32>
    %cst_10 = arith.constant 5.000000e-01 : f32
    %22 = vector.broadcast %cst_10 : f32 to vector<16x4xf32>
    %23 = arith.mulf %22, %21 : vector<16x4xf32>
    %24 = math.exp %23 : vector<16x4xf32>
    %c0_11 = arith.constant 0 : index
    %c0_12 = arith.constant 0 : index
    %c0_13 = arith.constant 0 : index
    %25 = vector.load %arg3[%c0_11, %c0_12, %c0_13] : memref<1x16x4xf32, #tpu.memory_space<vmem>>, vector<1x16x4xf32>
    %26 = vector.shape_cast %25 : vector<1x16x4xf32> to vector<16x4xf32>
    %27 = arith.mulf %24, %26 : vector<16x4xf32>
    %28 = arith.addf %16, %27 : vector<16x4xf32>
    %cst_14 = arith.constant 1.821500e-01 : f32
    %29 = vector.broadcast %cst_14 : f32 to vector<16x4xf32>
    %30 = arith.mulf %28, %29 : vector<16x4xf32>
    %c0_15 = arith.constant 0 : index
    %c0_16 = arith.constant 0 : index
    %c0_17 = arith.constant 0 : index
    %31 = vector.load %arg4[%c0_15, %c0_16, %c0_17] : memref<1x16x4xf32, #tpu.memory_space<vmem>>, vector<1x16x4xf32>
    %32 = vector.shape_cast %31 : vector<1x16x4xf32> to vector<16x4xf32>
    %33 = vector.broadcast %1 : f32 to vector<16x4xf32>
    %34 = arith.mulf %33, %30 : vector<16x4xf32>
    %35 = vector.broadcast %3 : f32 to vector<16x4xf32>
    %36 = arith.mulf %35, %32 : vector<16x4xf32>
    %37 = arith.addf %34, %36 : vector<16x4xf32>
    %c8 = arith.constant 8 : index
    %c0_18 = arith.constant 0 : index
    %38 = vector.load %arg9[%c8, %c0_18] : memref<16x32xf32, #tpu.memory_space<vmem>>, vector<4x32xf32>
    %c0_19 = arith.constant 0 : index
    %c0_20 = arith.constant 0 : index
    %39 = vector.load %arg9[%c0_19, %c0_20] : memref<16x32xf32, #tpu.memory_space<vmem>>, vector<1x32xf32>
    %40 = vector.shape_cast %39 : vector<1x32xf32> to vector<1x32xf32>
    %41 = vector.broadcast %40 : vector<1x32xf32> to vector<16x32xf32>
    %42 = vector.extract_strided_slice %37 {offsets = [0, 0], sizes = [16, 1], strides = [1, 1]} : vector<16x4xf32> to vector<16x1xf32>
    %43 = vector.extract_strided_slice %38 {offsets = [0, 0], sizes = [1, 32], strides = [1, 1]} : vector<4x32xf32> to vector<1x32xf32>
    %44 = vector.broadcast %42 : vector<16x1xf32> to vector<16x32xf32>
    %45 = vector.broadcast %43 : vector<1x32xf32> to vector<16x32xf32>
    %46 = arith.mulf %44, %45 : vector<16x32xf32>
    %47 = arith.addf %41, %46 : vector<16x32xf32>
    %48 = vector.extract_strided_slice %37 {offsets = [0, 1], sizes = [16, 1], strides = [1, 1]} : vector<16x4xf32> to vector<16x1xf32>
    %49 = vector.extract_strided_slice %38 {offsets = [1, 0], sizes = [1, 32], strides = [1, 1]} : vector<4x32xf32> to vector<1x32xf32>
    %50 = vector.broadcast %48 : vector<16x1xf32> to vector<16x32xf32>
    %51 = vector.broadcast %49 : vector<1x32xf32> to vector<16x32xf32>
    %52 = arith.mulf %50, %51 : vector<16x32xf32>
    %53 = arith.addf %47, %52 : vector<16x32xf32>
    %54 = vector.extract_strided_slice %37 {offsets = [0, 2], sizes = [16, 1], strides = [1, 1]} : vector<16x4xf32> to vector<16x1xf32>
    %55 = vector.extract_strided_slice %38 {offsets = [2, 0], sizes = [1, 32], strides = [1, 1]} : vector<4x32xf32> to vector<1x32xf32>
    %56 = vector.broadcast %54 : vector<16x1xf32> to vector<16x32xf32>
    %57 = vector.broadcast %55 : vector<1x32xf32> to vector<16x32xf32>
    %58 = arith.mulf %56, %57 : vector<16x32xf32>
    %59 = arith.addf %53, %58 : vector<16x32xf32>
    %60 = vector.extract_strided_slice %37 {offsets = [0, 3], sizes = [16, 1], strides = [1, 1]} : vector<16x4xf32> to vector<16x1xf32>
    %61 = vector.extract_strided_slice %38 {offsets = [3, 0], sizes = [1, 32], strides = [1, 1]} : vector<4x32xf32> to vector<1x32xf32>
    %62 = vector.broadcast %60 : vector<16x1xf32> to vector<16x32xf32>
    %63 = vector.broadcast %61 : vector<1x32xf32> to vector<16x32xf32>
    %64 = arith.mulf %62, %63 : vector<16x32xf32>
    %65 = arith.addf %59, %64 : vector<16x32xf32>
    %c0_21 = arith.constant 0 : index
    %c0_22 = arith.constant 0 : index
    %66 = vector.load %arg8[%c0_21, %c0_22] : memref<32x196xbf16, #tpu.memory_space<vmem>>, vector<32x32xbf16>
    %c0_23 = arith.constant 0 : index
    %c32 = arith.constant 32 : index
    %67 = vector.load %arg8[%c0_23, %c32] : memref<32x196xbf16, #tpu.memory_space<vmem>>, vector<32x32xbf16>
    %c1_24 = arith.constant 1 : index
    %c0_25 = arith.constant 0 : index
    %68 = vector.load %arg9[%c1_24, %c0_25] : memref<16x32xf32, #tpu.memory_space<vmem>>, vector<1x32xf32>
    %c2 = arith.constant 2 : index
    %c0_26 = arith.constant 0 : index
    %69 = vector.load %arg9[%c2, %c0_26] : memref<16x32xf32, #tpu.memory_space<vmem>>, vector<1x32xf32>
    %c0_27 = arith.constant 0 : index
    %c0_28 = arith.constant 0 : index
    %c0_29 = arith.constant 0 : index
    %70 = vector.load %arg6[%c0_27, %c0_28, %c0_29] : memref<1x1x32xf32, #tpu.memory_space<vmem>>, vector<1x1x32xf32>
    %71 = vector.shape_cast %70 : vector<1x1x32xf32> to vector<1x32xf32>
    %72 = arith.truncf %71 : vector<1x32xf32> to vector<1x32xbf16>
    %cst_30 = arith.constant dense<0.000000e+00> : vector<1x32xf32>
    %73 = tpu.matmul %72, %66, %cst_30 {dimension_numbers = #tpu.dot_dimension_numbers<[1], [0], [0], [1], [0, 0, 1, 1], [], []>} : vector<1x32xbf16>, vector<32x32xbf16>, vector<1x32xf32> -> vector<1x32xf32>
    %74 = arith.addf %73, %68 : vector<1x32xf32>
    %75 = arith.negf %74 : vector<1x32xf32>
    %76 = math.exp %75 : vector<1x32xf32>
    %cst_31 = arith.constant 1.000000e+00 : f32
    %77 = vector.broadcast %cst_31 : f32 to vector<1x32xf32>
    %78 = arith.addf %77, %76 : vector<1x32xf32>
    %79 = arith.divf %77, %78 : vector<1x32xf32>
    %80 = arith.mulf %74, %79 : vector<1x32xf32>
    %81 = arith.truncf %80 : vector<1x32xf32> to vector<1x32xbf16>
    %cst_32 = arith.constant dense<0.000000e+00> : vector<1x32xf32>
    %82 = tpu.matmul %81, %67, %cst_32 {dimension_numbers = #tpu.dot_dimension_numbers<[1], [0], [0], [1], [0, 0, 1, 1], [], []>} : vector<1x32xbf16>, vector<32x32xbf16>, vector<1x32xf32> -> vector<1x32xf32>
    %83 = arith.addf %82, %69 : vector<1x32xf32>
    %84 = vector.broadcast %83 : vector<1x32xf32> to vector<16x32xf32>
    %85 = arith.addf %65, %84 : vector<16x32xf32>
    %c0_33 = arith.constant 0 : index
    %c64 = arith.constant 64 : index
    %86 = vector.load %arg8[%c0_33, %c64] : memref<32x196xbf16, #tpu.memory_space<vmem>>, vector<32x32xbf16>
    %c0_34 = arith.constant 0 : index
    %c96 = arith.constant 96 : index
    %87 = vector.load %arg8[%c0_34, %c96] : memref<32x196xbf16, #tpu.memory_space<vmem>>, vector<32x64xbf16>
    %c0_35 = arith.constant 0 : index
    %c160 = arith.constant 160 : index
    %88 = vector.load %arg8[%c0_35, %c160] : memref<32x196xbf16, #tpu.memory_space<vmem>>, vector<32x32xbf16>
    %c0_36 = arith.constant 0 : index
    %c0_37 = arith.constant 0 : index
    %c0_38 = arith.constant 0 : index
    %89 = vector.load %arg5[%c0_36, %c0_37, %c0_38] : memref<1x8x32xf32, #tpu.memory_space<vmem>>, vector<1x8x32xf32>
    %90 = vector.shape_cast %89 : vector<1x8x32xf32> to vector<8x32xf32>
    %91 = arith.truncf %85 : vector<16x32xf32> to vector<16x32xbf16>
    %cst_39 = arith.constant dense<0.000000e+00> : vector<16x32xf32>
    %92 = tpu.matmul %91, %86, %cst_39 {dimension_numbers = #tpu.dot_dimension_numbers<[1], [0], [0], [1], [0, 0, 1, 1], [], []>} : vector<16x32xbf16>, vector<32x32xbf16>, vector<16x32xf32> -> vector<16x32xf32>
    %93 = arith.truncf %90 : vector<8x32xf32> to vector<8x32xbf16>
    %cst_40 = arith.constant dense<0.000000e+00> : vector<8x64xf32>
    %94 = tpu.matmul %93, %87, %cst_40 {dimension_numbers = #tpu.dot_dimension_numbers<[1], [0], [0], [1], [0, 0, 1, 1], [], []>} : vector<8x32xbf16>, vector<32x64xbf16>, vector<8x64xf32> -> vector<8x64xf32>
    %95 = vector.extract_strided_slice %94 {offsets = [0, 0], sizes = [8, 32], strides = [1, 1]} : vector<8x64xf32> to vector<8x32xf32>
    %96 = vector.extract_strided_slice %94 {offsets = [0, 32], sizes = [8, 32], strides = [1, 1]} : vector<8x64xf32> to vector<8x32xf32>
    %97 = arith.truncf %92 : vector<16x32xf32> to vector<16x32xbf16>
    %98 = arith.truncf %95 : vector<8x32xf32> to vector<8x32xbf16>
    %cst_41 = arith.constant dense<0.000000e+00> : vector<16x8xf32>
    %99 = tpu.matmul %97, %98, %cst_41 {dimension_numbers = #tpu.dot_dimension_numbers<[1], [1], [0], [0], [0, 0, 1, 0], [], []>} : vector<16x32xbf16>, vector<8x32xbf16>, vector<16x8xf32> -> vector<16x8xf32>
    %cst_42 = arith.constant dense<0xFF800000> : vector<16xf32>
    %100 = vector.multi_reduction <maximumf>, %99, %cst_42 [1] : vector<16x8xf32> to vector<16xf32>
    %101 = vector.shape_cast %100 : vector<16xf32> to vector<16x1xf32>
    %102 = vector.broadcast %101 : vector<16x1xf32> to vector<16x8xf32>
    %103 = arith.subf %99, %102 : vector<16x8xf32>
    %104 = math.exp %103 : vector<16x8xf32>
    %cst_43 = arith.constant dense<0.000000e+00> : vector<16xf32>
    %105 = vector.multi_reduction <add>, %104, %cst_43 [1] : vector<16x8xf32> to vector<16xf32>
    %106 = vector.shape_cast %105 : vector<16xf32> to vector<16x1xf32>
    %107 = tpu.reciprocal %106 {approx = true} : vector<16x1xf32> -> vector<16x1xf32>
    %108 = vector.broadcast %107 : vector<16x1xf32> to vector<16x8xf32>
    %109 = arith.mulf %104, %108 : vector<16x8xf32>
    %110 = arith.truncf %109 : vector<16x8xf32> to vector<16x8xbf16>
    %111 = arith.truncf %96 : vector<8x32xf32> to vector<8x32xbf16>
    %cst_44 = arith.constant dense<0.000000e+00> : vector<16x32xf32>
    %112 = tpu.matmul %110, %111, %cst_44 {dimension_numbers = #tpu.dot_dimension_numbers<[1], [0], [0], [1], [0, 0, 1, 1], [], []>} : vector<16x8xbf16>, vector<8x32xbf16>, vector<16x32xf32> -> vector<16x32xf32>
    %113 = arith.truncf %112 : vector<16x32xf32> to vector<16x32xbf16>
    %cst_45 = arith.constant dense<0.000000e+00> : vector<16x32xf32>
    %114 = tpu.matmul %113, %88, %cst_45 {dimension_numbers = #tpu.dot_dimension_numbers<[1], [0], [0], [1], [0, 0, 1, 1], [], []>} : vector<16x32xbf16>, vector<32x32xbf16>, vector<16x32xf32> -> vector<16x32xf32>
    %115 = arith.addf %85, %114 : vector<16x32xf32>
    %c0_46 = arith.constant 0 : index
    %c192 = arith.constant 192 : index
    %116 = vector.load %arg8[%c0_46, %c192] : memref<32x196xbf16, #tpu.memory_space<vmem>>, vector<32x4xbf16>
    %c3 = arith.constant 3 : index
    %c0_47 = arith.constant 0 : index
    %117 = vector.load %arg9[%c3, %c0_47] : memref<16x32xf32, #tpu.memory_space<vmem>>, vector<1x4xf32>
    %118 = arith.negf %115 : vector<16x32xf32>
    %119 = math.exp %118 : vector<16x32xf32>
    %cst_48 = arith.constant 1.000000e+00 : f32
    %120 = vector.broadcast %cst_48 : f32 to vector<16x32xf32>
    %121 = arith.addf %120, %119 : vector<16x32xf32>
    %122 = arith.divf %120, %121 : vector<16x32xf32>
    %123 = arith.mulf %115, %122 : vector<16x32xf32>
    %124 = arith.truncf %123 : vector<16x32xf32> to vector<16x32xbf16>
    %cst_49 = arith.constant dense<0.000000e+00> : vector<16x4xf32>
    %125 = tpu.matmul %124, %116, %cst_49 {dimension_numbers = #tpu.dot_dimension_numbers<[1], [0], [0], [1], [0, 0, 1, 1], [], []>} : vector<16x32xbf16>, vector<32x4xbf16>, vector<16x4xf32> -> vector<16x4xf32>
    %126 = vector.broadcast %117 : vector<1x4xf32> to vector<16x4xf32>
    %127 = arith.addf %125, %126 : vector<16x4xf32>
    %128 = arith.subf %127, %32 : vector<16x4xf32>
    %129 = arith.mulf %128, %128 : vector<16x4xf32>
    %c12 = arith.constant 12 : index
    %c0_50 = arith.constant 0 : index
    %130 = vector.load %arg9[%c12, %c0_50] : memref<16x32xf32, #tpu.memory_space<vmem>>, vector<4x4xf32>
    %cst_51 = arith.constant dense<0.000000e+00> : vector<4x16xf32>
    %131 = tpu.matmul %130, %129, %cst_51 {dimension_numbers = #tpu.dot_dimension_numbers<[1], [1], [0], [0], [0, 0, 1, 0], [], []>} : vector<4x4xf32>, vector<16x4xf32>, vector<4x16xf32> -> vector<4x16xf32>
    %c0_52 = arith.constant 0 : index
    %c0_53 = arith.constant 0 : index
    %c0_54 = arith.constant 0 : index
    %132 = vector.load %arg10[%c0_52, %c0_53, %c0_54] : memref<1x4x16xf32, #tpu.memory_space<vmem>>, vector<1x4x16xf32>
    %133 = vector.shape_cast %132 : vector<1x4x16xf32> to vector<4x16xf32>
    %134 = vector.shape_cast %131 : vector<4x16xf32> to vector<1x4x16xf32>
    tpu.vector_store %arg10[%c0_52, %c0_53, %c0_54], %134 {strides = array<i32>} : memref<1x4x16xf32, #tpu.memory_space<vmem>>, vector<1x4x16xf32>,
    return
  }
  func.func @transform_0(%arg0: i32) -> (i32, i32) {
    %c0_i32 = arith.constant 0 : i32
    %c0_i32_0 = arith.constant 0 : i32
    %c0_i32_1 = arith.constant 0 : i32
    return %c0_i32, %c0_i32_0 : i32, i32
  }
  func.func @transform_1(%arg0: i32) -> (i32, i32, i32) {
    %c0_i32 = arith.constant 0 : i32
    %c0_i32_0 = arith.constant 0 : i32
    %c0_i32_1 = arith.constant 0 : i32
    return %arg0, %c0_i32, %c0_i32_0 : i32, i32, i32
  }
  func.func @transform_2(%arg0: i32) -> (i32, i32, i32) {
    %c0_i32 = arith.constant 0 : i32
    %c0_i32_0 = arith.constant 0 : i32
    %c0_i32_1 = arith.constant 0 : i32
    return %arg0, %c0_i32, %c0_i32_0 : i32, i32, i32
  }
  func.func @transform_3(%arg0: i32) -> (i32, i32, i32) {
    %c0_i32 = arith.constant 0 : i32
    %c0_i32_0 = arith.constant 0 : i32
    %c0_i32_1 = arith.constant 0 : i32
    return %arg0, %c0_i32, %c0_i32_0 : i32, i32, i32
  }
  func.func @transform_4(%arg0: i32) -> (i32, i32, i32) {
    %c0_i32 = arith.constant 0 : i32
    %c0_i32_0 = arith.constant 0 : i32
    %c0_i32_1 = arith.constant 0 : i32
    return %arg0, %c0_i32, %c0_i32_0 : i32, i32, i32
  }
  func.func @transform_5(%arg0: i32) -> (i32, i32, i32) {
    %c0_i32 = arith.constant 0 : i32
    %c0_i32_0 = arith.constant 0 : i32
    %c0_i32_1 = arith.constant 0 : i32
    return %arg0, %c0_i32, %c0_i32_0 : i32, i32, i32
  }
  func.func @transform_6(%arg0: i32) -> (i32, i32) {
    %c0_i32 = arith.constant 0 : i32
    %c0_i32_0 = arith.constant 0 : i32
    %c0_i32_1 = arith.constant 0 : i32
    return %c0_i32, %c0_i32_0 : i32, i32
  }
  func.func @transform_7(%arg0: i32) -> (i32, i32) {
    %c0_i32 = arith.constant 0 : i32
    %c0_i32_0 = arith.constant 0 : i32
    %c0_i32_1 = arith.constant 0 : i32
    return %c0_i32, %c0_i32_0 : i32, i32
  }
  func.func @transform_8(%arg0: i32) -> (i32, i32) {
    %c0_i32 = arith.constant 0 : i32
    %c0_i32_0 = arith.constant 0 : i32
    %c0_i32_1 = arith.constant 0 : i32
    return %c0_i32, %c0_i32_0 : i32, i32
  }
  func.func @transform_9(%arg0: i32) -> (i32, i32, i32) {
    %c0_i32 = arith.constant 0 : i32
    %c0_i32_0 = arith.constant 0 : i32
    %c0_i32_1 = arith.constant 0 : i32
    return %arg0, %c0_i32, %c0_i32_0 : i32, i32, i32
  }
}

</mosaic_0001>

<bundles_post_ra>
// kernel: stable_diffusion_forward.3
= control target key start
LH: loop header
LB: loop body
LE: loop exit
PB: predicated region body
PF: predicated region fallthrough
CT: control target
= control target key end

     0   :  { %14 = vsyncpa [#allocation3], 0  ;;  %s1745_s30 = smov 0   ;;  %s1991_s0 = inlined_call_operand.vmem [shape: f32[2,2], index: 0, kind: input, shape index: {}]   ;;  %s1992_s1 = inlined_call_operand.vmem [shape: f32[2,16,192], index: 1, kind: input, shape index: {}]   ;;  %s1993_s2 = inlined_call_operand.vmem [shape: f32[2,16,4], index: 2, kind: input, shape index: {}]   ;;  %s1994_s3 = inlined_call_operand.vmem [shape: f32[2,16,4], index: 3, kind: input, shape index: {}]   ;;  %s1995_s4 = inlined_call_operand.vmem [shape: f32[2,8,32], index: 4, kind: input, shape index: {}]   ;;  %s1996_s5 = inlined_call_operand.vmem [shape: f32[2,1,32], index: 5, kind: input, shape index: {}]   ;;  %s1997_s6 = inlined_call_operand.vmem [shape: bf16[192,8], index: 6, kind: input, shape index: {}]   ;;  %s1998_s7 = inlined_call_operand.vmem [shape: bf16[32,196], index: 7, kind: input, shape index: {}]   ;;  %s1999_s8 = inlined_call_operand.vmem [shape: f32[16,32], index: 8, kind: input, shape index: {}]   ;;  %s2000_s9 = inlined_call_operand.vmem [shape: f32[2,4,16], index: 9, kind: output, shape index: {}]  }
   0x1 LB: > { %s1751_s10 = sadd.s32 4294967295, %s1680_s30   ;;  %p1413_p0 = scmp.ge.s32.totalorder %s1680_s30, 1  ;;  %s1680_s30 = sphi %s1745_s30, %s20_s30  }
   0x2   : > { %p265_p1 = scmp.lt.s32.totalorder %s1680_s30, 3  ;;  %s278_s13 = sshll.u32 %s1991_s0, 4  ;;  %s279_s13 = int_to_ptr.vmem [resolvable:$true] %s278_s13 }
   0x3   : > { %p1578_p3 = scmp.eq.s32.totalorder %s1751_s10, 0  ;;  %s1655_s15 = scalar_lea.vmem %s279_s13, 32 }
   0x4   : > { %p1758_p2 = pnand %p1413_p0, %p265_p1  ;;  %p1656_p6 = scmp.ne.s32.totalorder %s279_s13, %s1655_s15 }
   0x5   : > { %p1663_p10 = scmp.lt.s32.totalorder %s279_s13, %s279_s13  ;;  %p1664_p11 = scmp.lt.s32.totalorder %s1655_s15, %s1655_s15 }
   0x6   : > { %p1574_p4 = pneg %p1758_p2 }
   0x7   : > { %p1665_p12 = por %p1664_p11, %p1663_p10 }
   0x8   : > { %p1575_p5 = pnand %p1578_p3, %p1574_p4 }
   0xa   : > { %p1657_p7 = pneg %p1575_p5 }
   0xc   : > { %p1658_p8 = pnand %p1657_p7, %p1656_p6 }
   0xe   : > { %p1659_p9 = pneg %p1658_p8 }
  0x10   : > { %p1666_p13 = pnand %p1665_p12, %p1659_p9 }
  0x12   : > { %1669 = shalt.err (!%p1666_p13)
}
  0x13   : > { %s1682_s16 = smov [#allocation2]   ;;  %337 = sbr.rel (%p1758_p2) target bundleno = 2259 (0x8d3), region = 56 }
  0x14   : > { %1577 = dma.vmem_to_smem (!%p1575_p5), %s279_s13, 32, %s1682_s16, [#allocation3]  }
  0x1a   : > { %1675 = dma.done.wait (%p1578_p3), [#allocation3], 32  }
  0x1b   : > { %1677 = vsyncadd (%p1578_p3), [#allocation3], 4294967264 }
  0x1c   : > { %343 = sfence }
  0x1d   : > { %v1609_v0 = vld [vmem:[%s1997_s6] sm:$0xff]   ;;  %v1683_v1 = vmov 0   ;;  %p390_p0 = scmp.lt.s32.totalorder %s1751_s10, 1  ;;  %v1610_v2 = vld [vmem:[%s1997_s6 + $0x8] sm:$0xff]   ;;  %v1611_v3 = vld [vmem:[%s1997_s6 + $0x10] sm:$0xff]   ;;  %v1684_v4 = vmov 0.0  }
  0x1e   : > { %540 = vmatprep.subr.bf16.mxu0 %v1683_v1  ;;  %1601 = vset.pattern.permute.xlu0 %v1683_v1  ;;  %vm1685_vm0 = vmmov 0   ;;  %v1612_v5 = vld [vmem:[%s1997_s6 + $0x18] sm:$0xff]   ;;  %v1613_v8 = vld [vmem:[%s1997_s6 + $0x20] sm:$0xff]   ;;  %s1686_s23 = smov 4   ;;  %vm536_vm1 = vcmask 523264   ;;  %v1614_v19 = vld [vmem:[%s1997_s6 + $0x28] sm:$0xff]  }
  0x1f   : > { %541 = vmatpush1.bf16.msra.mxu0 %v1609_v0  ;;  %s1784_s21 = scalar_select %p390_p0, %s1751_s10, 1  ;;  %1499 = vmatprep.subr.bf16.mxu1 %v1684_v4  ;;  %v1817_v11 = vld [vmem:[%s1998_s7] ss:$8 sps:$4 sm:$0xff]   ;;  %v1828_v15 = vld [vmem:[%s1998_s7 + $0x10] ss:$8 sps:$4 sm:$0xff]   ;;  %vm717_vm2 = vcmask 261120  }
  0x20   : > { %542 = vmatprep.subr.bf16.mxu0 %v1683_v1  ;;  %1503 = vmatprep.mubr.msk.bf16.mxu1 %vm1685_vm0, %v1684_v4  ;;  %s1687_s11 = smov 96   ;;  %v1615_v21 = vld [vmem:[%s1997_s6 + $0x30] sm:$0xff]   ;;  %v1616_v22 = vld [vmem:[%s1997_s6 + $0x38] sm:$0xff]   ;;  %v1617_v23 = vld [vmem:[%s1997_s6 + $0x40] sm:$0xff]   ;;  %v1688_v0 = vmov 1   ;;  %s1689_s12 = smov 124  }
  0x21   : > { %s1471_s24 = sshll.u32 %s1784_s21, 5  ;;  %s1472_s25 = sshll.u32 %s1784_s21, 4  ;;  %1500 = vmatpush3.bf16.msra.mxu1 %v1817_v11  ;;  %769 = vrot.lane.b32.xlu0 %v1817_v11, %s1687_s11  ;;  %v1618_v24 = vld [vmem:[%s1997_s6 + $0x48] sm:$0xff]   ;;  %v1619_v29 = vld [vmem:[%s1997_s6 + $0x50] sm:$0xff]   ;;  %v1620_v32 = vld [vmem:[%s1997_s6 + $0x58] sm:$0xff]   ;;  %vm1006_vm3 = vcmask 64512  }
  0x22   : > { %s1798_s28 = scalar_lea.vmem %s1992_s1, %s1471_s24  ;;  %s399_s14 = scalar_lea.vmem %s1993_s2, %s1472_s25  ;;  %1501 = vmatprep.subr.bf16.mxu1 %v1684_v4  ;;  %v701_v36 = vld [vmem:[%s1999_s8 + $0x1] sm:$0x1]  ;;  %v1431_v45 = vld [vmem:[%s1999_s8 + $0x4] ss:$0 sm:$0xff]  ;;  %1602 = vset.pattern.permute.xlu1 %v1688_v0  ;;  %vm1036_vm4 = vcmask 1043456   ;;  %vm1219_vm5 = vcmask 31744  }
  0x23   : > { %543 = vmatpush1.bf16.msra.mxu0 %v1610_v2  ;;  %v422_v6 = vld [vmem:[%s1798_s28 + $0x8] sm:$0xff]  ;;  %v424_v7 = vld [vmem:[%s1798_s28 + $0x18] sm:$0xff]  ;;  %s411_s22 = scalar_lea.vmem %s1996_s5, %s1784_s21  ;;  %v591_v12 = vld [vmem:[%s399_s14] sm:$0xff]  ;;  %s1426_s13 = sshll.u32 %s1751_s10, 7  ;;  %vm1299_vm7 = vcmask 125952  }
  0x24   : > { %544 = vmatprep.subr.bf16.mxu0 %v1683_v1  ;;  %v426_v9 = vmul.f32 2.0, %v422_v6  ;;  %v428_v10 = vmul.f32 2.0, %v424_v7  ;;  %595 = vrot.lane.b32.xlu1 %v591_v12, %s1686_s23  ;;  %v703_v17 = vld [vmem:[%s411_s22] sm:$0x1]  ;;  %v592_v18 = vld [vmem:[%s399_s14 + $0x8] sm:$0xff]  ;;  %v423_v26 = vld [vmem:[%s1798_s28 + $0x10] sm:$0xff]  ;;  %s404_s19 = scalar_lea.vmem %s1994_s3, %s1472_s25 }
  0x25   : > { %v704_v20 = vpack.c.bf16 %v703_v17, %v703_v17  ;;  %1502 = vmatpush3.bf16.msra.mxu1 %v1828_v15  ;;  %771 = vrot.lane.b32.xlu0 %v1828_v15, %s1687_s11  ;;  %v421_v25 = vld [vmem:[%s1798_s28] sm:$0xff]  ;;  %v427_v28 = vmul.f32 2.0, %v423_v26  ;;  %s419_s14 = sadd.s32 1, %s1426_s13  ;;  %s418_s16 = sld [smem:[#allocation2 + %s1426_s13]]  ;;  %v1690_v26 = vmov 2   ;;  %vm1568_vm6 = vmpackc.low %vm1219_vm5, %vm1219_vm5 }
  0x26   : > { %v1428_v13 = vadd.f32 -1.0, %v426_v9  ;;  %v1430_v14 = vadd.f32 -1.0, %v428_v10  ;;  %1507 = vmatprep.subr.bf16.mxu1 %v1684_v4  ;;  %v425_v27 = vmul.f32 2.0, %v421_v25  ;;  %s420_s15 = sld [smem:[#allocation2 + %s419_s14]]  ;;  %s1692_s10 = smov 64  }
  0x27   : > { %545 = vmatpush1.bf16.msra.mxu0 %v1611_v3  ;;  %v1429_v31 = vadd.f32 -1.0, %v427_v28  ;;  %v1625_v28 = vld [vmem:[%s1998_s7 + $0x4] ss:$8 sps:$4 sm:$0xff]   ;;  %s1693_s22 = smov 32   ;;  %s1424_s18 = sshll.u32 %s1784_s21, 3 }
  0x28   : > { %546 = vmatprep.subr.bf16.mxu0 %v1683_v1  ;;  %v435_v16 = vpack.c.bf16 %v1430_v14, %v1428_v13  ;;  %597 = vrot.lane.b32.xlu1 %v592_v18, %s1686_s23  ;;  %v1427_v30 = vadd.f32 -1.0, %v425_v27  ;;  %v1691_v27 = vmov 3   ;;  %s408_s20 = scalar_lea.vmem %s1995_s4, %s1424_s18  ;;  %s1425_s29 = sshll.u32 %s1784_s21, 2 }
  0x29   : > { %1504 = vmatmul.mubr.msk.bf16.vlgmr.msra.gmra.mrb[0].mxu1 %vm717_vm2, %v704_v20  ;;  %s415_s14 = scalar_lea.vmem %s2000_s9, %s1425_s29 }
  0x2a   : > { %1444 = vmatprep.mubr.msk.bf16.mxu0 %vm536_vm1, %v435_v16  ;;  %1511 = vmatprep.mubr.msk.bf16.mxu1 %vm1685_vm0, %v1684_v4  ;;  %v434_v33 = vpack.c.bf16 %v1429_v31, %v1427_v30 }
  0x2b   : > { %547 = vmatpush1.bf16.msra.mxu0 %v1612_v5  ;;  %v617_v13 = vstv %s418_s16 }
  0x2c   : > { %548 = vmatprep.subr.bf16.mxu0 %v1683_v1  ;;  %v620_v9 = vstv %s420_s15 }
  0x2f   : > { %549 = vmatpush1.bf16.msra.mxu0 %v1613_v8  ;;  %v1890_v8 = vld [vmem:[%s404_s19] sm:$0xff] }
  0x30   : > { %550 = vmatprep.subr.bf16.mxu0 %v1683_v1  ;;  %v621_v16 = vmul.f32 %v620_v9, %v1890_v8 }
  0x33   : > { %551 = vmatpush1.bf16.msra.mxu0 %v1614_v19  ;;  %v1893_v19 = vld [vmem:[%s404_s19 + $0x8] sm:$0xff] }
  0x34   : > { %552 = vmatprep.subr.bf16.mxu0 %v1683_v1 }
  0x37   : > { %553 = vmatpush1.bf16.msra.mxu0 %v1615_v21 }
  0x38   : > { %554 = vmatprep.subr.bf16.mxu0 %v1683_v1 }
  0x3b   : > { %555 = vmatpush1.bf16.msra.mxu0 %v1616_v22 }
  0x3c   : > { %556 = vmatprep.subr.bf16.mxu0 %v1683_v1 }
  0x3f   : > { %557 = vmatpush1.bf16.msra.mxu0 %v1617_v23  ;;  %v622_v23 = vmul.f32 %v620_v9, %v1893_v19 }
  0x40   : > { %558 = vmatprep.subr.bf16.mxu0 %v1683_v1 }
  0x43   : > { %559 = vmatpush1.bf16.msra.mxu0 %v1618_v24 }
  0x44   : > { %560 = vmatprep.subr.bf16.mxu0 %v1683_v1 }
  0x47   : > { %561 = vmatpush1.bf16.msra.mxu0 %v1619_v29  ;;  %v1626_v29 = vld [vmem:[%s1998_s7 + $0x10] ss:$8 sps:$4 sm:$0xff]  }
  0x48   : > { %562 = vmatprep.subr.bf16.mxu0 %v1683_v1 }
  0x4b   : > { %563 = vmatpush1.bf16.msra.mxu0 %v1620_v32 }
  0x4c   : > { %1543 = vmatprep.subr.bf16.mxu0 %v1684_v4 }
  0x4e   : > { %573 = vmatmul.mubr.bf16.vlgmr.msra.gmra.mrb[0].mxu0 %v434_v33 }
  0x4f   : > { %1547 = vmatprep.mubr.msk.bf16.mxu0 %vm1685_vm0, %v1684_v4 }
  0x93   : > { %v770_v34 = vpop.permute.xlu0 %769 }
  0x94   : > { %1508 = vmatpush3.bf16.msra.mxu1 %v770_v34  ;;  %v641_v34 = vlaneseq }
  0x95   : > { %1509 = vmatprep.subr.bf16.mxu1 %v1684_v4 }
  0x96   : > { %v596_v63 = vpop.permute.xlu1 %595 }
  0x97   : > { %v772_v35 = vpop.permute.xlu0 %771 }
  0x98   : > { %1510 = vmatpush3.bf16.msra.mxu1 %v772_v35  ;;  %v642_v35 = vshrl.u32 %v641_v34, 7 }
  0x99   : > { %1515 = vmatprep.subr.bf16.mxu1 %v1684_v4 }
  0x9a   : > { %v598_v3 = vpop.permute.xlu1 %597 }
  0xfc   : > { %v755_v37 = vpop.f32.mrb[0].mxu1 }
  0xfd   : > { %v756_v38 = vadd.f32 %v755_v37, %v701_v36  ;;  %v1505_v39 = vpop.f32.mrb[1].mxu1  ;;  %v643_v37 = vsub.s32 0, %v642_v35 }
  0xfe   : > { %v758_v40 = vpop.f32.mrb[2].mxu1 }
  0xff   : > { %v1449_v41 = vmul.f32 -1.442695, %v756_v38  ;;  %v1506_v42 = vpop.f32.mrb[3].mxu1 }
 0x101   : > { %1631 = vpow2.f32 %v1449_v41  ;;  %v659_v41 = vsub.s32 1, %v642_v35 }
 0x10b   : > { %v1632_v43 = vpop.eup %1631 }
 0x10c   : > { %v764_v44 = vadd.f32 1.0, %v1632_v43 }
 0x10e   : > { %1633 = vrcp.f32 %v764_v44  ;;  %v675_v44 = vsub.s32 2, %v642_v35 }
 0x118   : > { %v1634_v49 = vpop.eup %1633 }
 0x119   : > { %v767_v54 = vmul.f32 %v1634_v49, %v756_v38  ;;  %v691_v49 = vsub.s32 3, %v642_v35 }
 0x11b   : > { %v768_v57 = vpack.c.bf16 %v767_v54, %v767_v54 }
 0x11d   : > { %1512 = vmatmul.mubr.msk.bf16.vlgmr.msra.gmra.mrb[4].mxu1 %vm717_vm2, %v768_v57 }
 0x11e   : > { %1519 = vmatprep.mubr.msk.bf16.mxu1 %vm1685_vm0, %v1684_v4 }
 0x121   : > { %v574_v46 = vpop.f32.mrb[0].mxu0 }
 0x122   : > { %v575_v47 = vadd.f32 %v1431_v45, %v574_v46  ;;  %v576_v48 = vpop.f32.mrb[1].mxu0  ;;  %v1445_v46 = vld [vmem:[%s1999_s8] ss:$0 sm:$0xff] }
 0x123   : > { %v577_v50 = vpop.f32.mrb[2].mxu0 }
 0x124   : > { %v581_v51 = vmax.f32 %v575_v47, -30.0  ;;  %v578_v52 = vadd.f32 %v1431_v45, %v577_v50  ;;  %v579_v53 = vpop.f32.mrb[3].mxu0 }
 0x126   : > { %v583_v55 = vmin.f32 %v581_v51, 20.0  ;;  %v582_v56 = vmax.f32 %v578_v52, -30.0 }
 0x128   : > { %v585_v58 = vmul.f32 0.5, %v583_v55  ;;  %v584_v59 = vmin.f32 %v582_v56, 20.0 }
 0x12a   : > { %v587_v60 = vmul.f32 1.442695, %v585_v58  ;;  %v586_v61 = vmul.f32 0.5, %v584_v59  ;;  %v702_v58 = vld [vmem:[%s1999_s8 + $0x2] sm:$0x1] }
 0x12c   : > { %1635 = vpow2.f32 %v587_v60  ;;  %v589_v62 = vmul.f32 1.442695, %v586_v61 }
 0x12e   : > { %1637 = vpow2.f32 %v589_v62 }
 0x136   : > { %v1636_v2 = vpop.eup %1635 }
 0x137   : > { %v601_v5 = vmul.f32 %v1636_v2, %v596_v63 }
 0x138   : > { %v1638_v6 = vpop.eup %1637 }
 0x139   : > { %v602_v7 = vmul.f32 %v1638_v6, %v598_v3  ;;  %605 = vrot.lane.b32.xlu0 %v601_v5, %s1689_s12 }
 0x13b   : > { %607 = vrot.lane.b32.xlu1 %v602_v7, %s1689_s12 }
 0x1ab   : > { %v606_v10 = vpop.permute.xlu0 %605 }
 0x1ac   : > { %v611_v12 = vadd.f32 %v606_v10, %v575_v47 }
 0x1ad   : > { %v608_v14 = vpop.permute.xlu1 %607 }
 0x1ae   : > { %v613_v17 = vmul.f32 0.18215, %v611_v12  ;;  %v612_v18 = vadd.f32 %v608_v14, %v578_v52 }
 0x1b0   : > { %v618_v20 = vmul.f32 %v617_v13, %v613_v17  ;;  %v614_v21 = vmul.f32 0.18215, %v612_v18 }
 0x1b2   : > { %v623_v22 = vadd.f32 %v621_v16, %v618_v20  ;;  %v619_v24 = vmul.f32 %v617_v13, %v614_v21 }
 0x1b4   : > { %650 = vperm.xlu1 %1602, %v623_v22   ;;  %633 = vperm.xlu0 %1601, %v623_v22   ;;  %v624_v25 = vadd.f32 %v622_v23, %v619_v24  ;;  %v832_v24 = vld [vmem:[%s408_s20] sm:$0xff] }
 0x1b8   : > { %1603 = vset.pattern.permute.xlu1 %v1690_v26  ;;  %1605 = vset.pattern.permute.xlu0 %v1688_v0 }
 0x1b9   : > { %666 = vperm.xlu1 %1603, %v623_v22   ;;  %654 = vperm.xlu0 %1605, %v624_v25  }
 0x1bd   : > { %1604 = vset.pattern.permute.xlu1 %v1683_v1  ;;  %1606 = vset.pattern.permute.xlu0 %v1691_v27  ;;  %v1628_v1 = vld [vmem:[%s1998_s7 + $0x14] ss:$8 sps:$4 sm:$0xff]  }
 0x1be   : > { %638 = vperm.xlu1 %1604, %v624_v25   ;;  %682 = vperm.xlu0 %1606, %v623_v22  }
 0x1c2   : > { %1607 = vset.pattern.permute.xlu1 %v1690_v26  ;;  %836 = vrot.lane.b32.xlu0 %v1828_v15, %s1692_s10  ;;  %v1623_v15 = vld [vmem:[%s1998_s7] ss:$8 sps:$4 sm:$0xff]   ;;  %v884_v26 = vpack.c.bf16 %v832_v24, %v832_v24 }
 0x1c3   : > { %670 = vperm.xlu1 %1607, %v624_v25  }
 0x1c6   : > { %903 = vrot.lane.b32.xlu0 %v1625_v28, %s1693_s22 }
 0x1c7   : > { %1608 = vset.pattern.permute.xlu1 %v1691_v27 }
 0x1c8   : > { %686 = vperm.xlu1 %1608, %v624_v25  }
 0x1ca   : > { %907 = vrot.lane.b32.xlu0 %v1628_v1, %s1693_s22 }
 0x1cc   : > { %834 = vrot.lane.b32.xlu1 %v1817_v11, %s1692_s10  ;;  %v625_v11 = vld [vmem:[%s1999_s8 + $0x8] sm:$0xf] }
 0x1cd   : > { %v644_v40 = vrot.slane %v625_v11, %v643_v37  ;;  %v660_v48 = vrot.slane %v625_v11, %v659_v41  ;;  %v676_v52 = vrot.slane %v625_v11, %v675_v44  ;;  %v692_v57 = vrot.slane %v625_v11, %v691_v49 }
 0x1d0   : > { %901 = vrot.lane.b32.xlu1 %v1623_v15, %s1693_s22 }
 0x1d4   : > { %905 = vrot.lane.b32.xlu1 %v1626_v29, %s1693_s22 }
 0x1f0   : > { %v812_v30 = vpop.f32.mrb[4].mxu1 }
 0x1f1   : > { %v1513_v31 = vpop.f32.mrb[5].mxu1  ;;  %v813_v0 = vadd.f32 %v812_v30, %v702_v58 }
 0x1f2   : > { %v815_v32 = vpop.f32.mrb[6].mxu1 }
 0x1f3   : > { %v1514_v33 = vpop.f32.mrb[7].mxu1  ;;  %v821_v10 = vrot.slane %v813_v0, %v643_v37 }
 0x233   : > { %v651_v36 = vpop.permute.xlu1 %650  ;;  %v634_v38 = vpop.permute.xlu0 %633 }
 0x234   : > { %v645_v43 = vmul.f32 %v644_v40, %v634_v38  ;;  %v661_v56 = vmul.f32 %v660_v48, %v651_v36 }
 0x236   : > { %v647_v51 = vadd.f32 %v1445_v46, %v645_v43 }
 0x238   : > { %v667_v39 = vpop.permute.xlu1 %666  ;;  %v655_v42 = vpop.permute.xlu0 %654  ;;  %v663_v61 = vadd.f32 %v661_v56, %v647_v51  ;;  %v1629_v51 = vld [vmem:[%s1998_s7 + $0x4] ss:$8 sps:$4 sm:$0xff]  }
 0x239   : > { %v662_v53 = vmul.f32 %v660_v48, %v655_v42  ;;  %v677_v62 = vmul.f32 %v676_v52, %v667_v39 }
 0x23b   : > { %v679_v7 = vadd.f32 %v677_v62, %v663_v61 }
 0x23d   : > { %v639_v45 = vpop.permute.xlu1 %638  ;;  %v683_v54 = vpop.permute.xlu0 %682 }
 0x23e   : > { %v646_v47 = vmul.f32 %v644_v40, %v639_v45  ;;  %v693_v2 = vmul.f32 %v692_v57, %v683_v54 }
 0x240   : > { %v648_v50 = vadd.f32 %v1445_v46, %v646_v47  ;;  %v695_v12 = vadd.f32 %v693_v2, %v679_v7 }
 0x241   : > { %v837_v63 = vpop.permute.xlu0 %836 }
 0x242   : > { %v671_v55 = vpop.permute.xlu1 %670  ;;  %v664_v59 = vadd.f32 %v662_v53, %v648_v50  ;;  %v1926_v17 = vadd.f32 %v821_v10, %v695_v12 }
 0x243   : > { %v678_v60 = vmul.f32 %v676_v52, %v671_v55  ;;  %v1630_v52 = vld [vmem:[%s1998_s7 + $0x14] ss:$8 sps:$4 sm:$0xff]  }
 0x245   : > { %v680_v5 = vadd.f32 %v678_v60, %v664_v59  ;;  %v904_v14 = vpop.permute.xlu0 %903 }
 0x247   : > { %v687_v3 = vpop.permute.xlu1 %686 }
 0x248   : > { %v694_v6 = vmul.f32 %v692_v57, %v687_v3 }
 0x249   : > { %v908_v22 = vpop.permute.xlu0 %907 }
 0x24a   : > { %v696_v9 = vadd.f32 %v694_v6, %v680_v5 }
 0x24b   : > { %v835_v13 = vpop.permute.xlu1 %834 }
 0x24c   : > { %1516 = vmatpush3.bf16.msra.mxu1 %v835_v13  ;;  %v1922_v16 = vadd.f32 %v821_v10, %v696_v9 }
 0x24d   : > { %1517 = vmatprep.subr.bf16.mxu1 %v1684_v4 }
 0x24e   : > { %v833_v20 = vpack.c.bf16 %v1922_v16, %v1926_v17 }
 0x24f   : > { %v902_v18 = vpop.permute.xlu1 %901 }
 0x250   : > { %1518 = vmatpush3.bf16.msra.mxu1 %v837_v63  ;;  %v910_v21 = vsel %vm717_vm2, %v902_v18, %v904_v14 }
 0x251   : > { %1523 = vmatprep.subr.bf16.mxu1 %v1684_v4 }
 0x253   : > { %1520 = vmatmul.mubr.msk.bf16.vlgmr.msra.gmra.mrb[8].mxu1 %vm717_vm2, %v833_v20  ;;  %v906_v23 = vpop.permute.xlu1 %905 }
 0x254   : > { %1524 = vmatpush3.bf16.msra.mxu1 %v910_v21  ;;  %1527 = vmatprep.mubr.msk.bf16.mxu1 %vm1685_vm0, %v1684_v4  ;;  %v911_v25 = vsel %vm717_vm2, %v906_v23, %v908_v22 }
 0x255   : > { %1525 = vmatprep.subr.bf16.mxu1 %v1684_v4 }
 0x258   : > { %1526 = vmatpush3.bf16.msra.mxu1 %v911_v25 }
 0x259   : > { %1531 = vmatprep.subr.bf16.mxu1 %v1684_v4 }
 0x25b   : > { %1528 = vmatmul.mubr.msk.bf16.vlgmr.msra.gmra.mrb[12].mxu1 %vm717_vm2, %v884_v26 }
 0x25c   : > { %1533 = vmatprep.mubr.msk.bf16.mxu1 %vm1685_vm0, %v1684_v4 }
 0x326   : > { %v877_v27 = vpop.f32.mrb[8].mxu1 }
 0x327   : > { %v1521_v28 = vpop.f32.mrb[9].mxu1 }
 0x328   : > { %v880_v1 = vpop.f32.mrb[10].mxu1 }
 0x329   : > { %v957_v15 = vpack.c.bf16 %v880_v1, %v877_v27  ;;  %v1522_v29 = vpop.f32.mrb[11].mxu1 }
 0x32e   : > { %v951_v30 = vpop.f32.mrb[12].mxu1 }
 0x32f   : > { %v958_v31 = vpack.c.bf16 %v951_v30, %v951_v30  ;;  %v1529_v32 = vpop.f32.mrb[13].mxu1 }
 0x330   : > { %v954_v33 = vpop.f32.mrb[14].mxu1 }
 0x331   : > { %v963_v34 = vsel %vm717_vm2, %v958_v31, 0  ;;  %v1530_v35 = vpop.f32.mrb[15].mxu1 }
 0x332   : > { %1532 = vmatpush3.bf16.xpose.msra.mxu1 %v963_v34 }
 0x333   : > { %1537 = vmatprep.subr.bf16.mxu1 %v1684_v4 }
 0x339   : > { %1534 = vmatmul.mubr.msk.bf16.vlgmr.msra.gmra.mrb[16].mxu1 %vm717_vm2, %v957_v15  ;;  %v1694_v15 = vmov 0.0|0.0  }
 0x33a   : > { %1539 = vmatprep.mubr.msk.bf16.mxu1 %vm1685_vm0, %v1684_v4 }
 0x40c   : > { %v999_v36 = vpop.f32.mrb[16].mxu1 }
 0x40d   : > { %v1535_v37 = vpop.f32.mrb[17].mxu1  ;;  %v1007_v11 = vsel %vm1006_vm3, %v999_v36, -inf }
 0x40e   : > { %1008 = vmax.xlane.f32.xlu1 %v1007_v11  ;;  %v1002_v38 = vpop.f32.mrb[18].mxu1 }
 0x40f   : > { %v1536_v39 = vpop.f32.mrb[19].mxu1  ;;  %v1010_v40 = vsel %vm1006_vm3, %v1002_v38, -inf }
 0x410   : > { %1011 = vmax.xlane.f32.xlu0 %v1010_v40  ;;  %v1218_v39 = vld [vmem:[%s1999_s8 + $0xc] sm:$0xf] }
 0x49b   : > { %v1009_v41 = vpop.xlane.xlu1 %1008 }
 0x49c   : > { %v1013_v42 = vsub.f32 %v999_v36, %v1009_v41 }
 0x49d   : > { %v1012_v43 = vpop.xlane.xlu0 %1011 }
 0x49e   : > { %v1015_v44 = vmul.f32 1.442695, %v1013_v42  ;;  %v1014_v45 = vsub.f32 %v1002_v38, %v1012_v43 }
 0x4a0   : > { %1639 = vpow2.f32 %v1015_v44  ;;  %v1017_v46 = vmul.f32 1.442695, %v1014_v45 }
 0x4a2   : > { %1641 = vpow2.f32 %v1017_v46 }
 0x4aa   : > { %v1640_v47 = vpop.eup %1639 }
 0x4ab   : > { %v1019_v48 = vsel %vm1006_vm3, %v1640_v47, 0.0 }
 0x4ac   : > { %v1642_v49 = vpop.eup %1641  ;;  %1020 = vadd.xlane.f32.xlu0 %v1019_v48 }
 0x4ad   : > { %v1022_v50 = vsel %vm1006_vm3, %v1642_v49, 0.0 }
 0x4ae   : > { %1023 = vadd.xlane.f32.xlu1 %v1022_v50 }
 0x4bf   : > { %1092 = vrot.lane.b32.xlu1 %v1629_v51, %s1687_s11 }
 0x4c2   : > { %1031 = vrot.lane.b32.xlu0 %v958_v31, %s1687_s11 }
 0x4c3   : > { %1094 = vrot.lane.b32.xlu1 %v1630_v52, %s1687_s11 }
 0x4c6   : > { %1164 = vrot.lane.b32.xlu0 %v1629_v51, %s1692_s10 }
 0x4c7   : > { %1166 = vrot.lane.b32.xlu1 %v1630_v52, %s1692_s10 }
 0x539   : > { %v1021_v53 = vpop.xlane.xlu0 %1020 }
 0x53a   : > { %1643 = vrcp.f32 %v1021_v53 }
 0x53b   : > { %v1024_v54 = vpop.xlane.xlu1 %1023 }
 0x53c   : > { %1645 = vrcp.f32 %v1024_v54 }
 0x53d   : > { %v1032_v55 = vpop.permute.xlu0 %1031 }
 0x53e   : > { %v1038_v56 = vsel %vm1036_vm4, %v1032_v55, 0 }
 0x53f   : > { %1538 = vmatpush3.bf16.msra.mxu1 %v1038_v56  ;;  %v1093_v57 = vpop.permute.xlu1 %1092 }
 0x540   : > { %1544 = vmatpush3.bf16.msra.mxu0 %v1093_v57  ;;  %1551 = vmatprep.subr.bf16.mxu1 %v1684_v4 }
 0x541   : > { %1545 = vmatprep.subr.bf16.mxu0 %v1684_v4  ;;  %v1165_v7 = vpop.permute.xlu0 %1164 }
 0x543   : > { %v1095_v63 = vpop.permute.xlu1 %1094 }
 0x544   : > { %v1644_v58 = vpop.eup %1643  ;;  %1546 = vmatpush3.bf16.msra.mxu0 %v1095_v63 }
 0x545   : > { %v1027_v60 = vmul.f32 %v1644_v58, %v1640_v47  ;;  %1566 = vmatprep.subr.bf16.mxu0 %v1694_v15 }
 0x546   : > { %v1646_v59 = vpop.eup %1645 }
 0x547   : > { %v1028_v61 = vmul.f32 %v1646_v59, %v1642_v49  ;;  %v1167_v9 = vpop.permute.xlu1 %1166 }
 0x549   : > { %v1029_v62 = vpack.c.bf16 %v1028_v61, %v1027_v60 }
 0x54b   : > { %1540 = vmatmul.mubr.msk.bf16.vlgmr.msra.gmra.mrb[20].mxu1 %vm1006_vm3, %v1029_v62 }
 0x54c   : > { %1555 = vmatprep.mubr.msk.bf16.mxu1 %vm1685_vm0, %v1684_v4  ;;  %1552 = vmatpush3.bf16.msra.mxu1 %v1165_v7 }
 0x54d   : > { %1553 = vmatprep.subr.bf16.mxu1 %v1684_v4 }
 0x550   : > { %1554 = vmatpush3.bf16.msra.mxu1 %v1167_v9 }
 0x61e   : > { %v1074_v0 = vpop.f32.mrb[20].mxu1 }
 0x61f   : > { %v1541_v2 = vpop.f32.mrb[21].mxu1 }
 0x620   : > { %v1077_v3 = vpop.f32.mrb[22].mxu1 }
 0x621   : > { %v1081_v5 = vpack.c.bf16 %v1077_v3, %v1074_v0  ;;  %v1542_v6 = vpop.f32.mrb[23].mxu1 }
 0x623   : > { %1548 = vmatmul.mubr.msk.bf16.vlgmr.msra.gmra.mrb[4].mxu0 %vm717_vm2, %v1081_v5 }
 0x624   : > { %1563 = vmatprep.mubr.msk.f32.mxu0 %vm1685_vm0, %v1684_v4 }
 0x6f6   : > { %v1135_v10 = vpop.f32.mrb[4].mxu0 }
 0x6f7   : > { %v1142_v12 = vadd.f32 %v1135_v10, %v1926_v17  ;;  %v1549_v13 = vpop.f32.mrb[5].mxu0 }
 0x6f8   : > { %v1138_v14 = vpop.f32.mrb[6].mxu0 }
 0x6f9   : > { %v1462_v18 = vmul.f32 -1.442695, %v1142_v12  ;;  %v1143_v20 = vadd.f32 %v1138_v14, %v1922_v16  ;;  %v1550_v21 = vpop.f32.mrb[7].mxu0  ;;  %v1464_v16 = vld [vmem:[%s1999_s8 + $0x3] ss:$0 sm:$0xff] }
 0x6fb   : > { %1647 = vpow2.f32 %v1462_v18  ;;  %v1463_v22 = vmul.f32 -1.442695, %v1143_v20 }
 0x6fd   : > { %1649 = vpow2.f32 %v1463_v22 }
 0x705   : > { %v1648_v23 = vpop.eup %1647 }
 0x706   : > { %v1151_v24 = vadd.f32 1.0, %v1648_v23 }
 0x707   : > { %v1650_v25 = vpop.eup %1649 }
 0x708   : > { %1651 = vrcp.f32 %v1151_v24  ;;  %v1152_v26 = vadd.f32 1.0, %v1650_v25 }
 0x70a   : > { %1653 = vrcp.f32 %v1152_v26 }
 0x712   : > { %v1652_v4 = vpop.eup %1651 }
 0x713   : > { %v1157_v28 = vmul.f32 %v1652_v4, %v1142_v12 }
 0x714   : > { %v1654_v27 = vpop.eup %1653 }
 0x715   : > { %v1158_v1 = vmul.f32 %v1654_v27, %v1143_v20 }
 0x717   : > { %v1159_v17 = vpack.c.bf16 %v1158_v1, %v1157_v28 }
 0x719   : > { %1556 = vmatmul.mubr.msk.bf16.vlgmr.msra.gmra.mrb[24].mxu1 %vm717_vm2, %v1159_v17 }
 0x7ec   : > { %v1207_v29 = vpop.f32.mrb[24].mxu1 }
 0x7ed   : > { %v1208_v30 = vadd.f32 %v1464_v16, %v1207_v29  ;;  %v1557_v31 = vpop.f32.mrb[25].mxu1 }
 0x7ee   : > { %v1210_v32 = vpop.f32.mrb[26].mxu1 }
 0x7ef   : > { %v1214_v33 = vsub.f32 %v1208_v30, %v1890_v8  ;;  %v1211_v34 = vadd.f32 %v1464_v16, %v1210_v32  ;;  %v1558_v35 = vpop.f32.mrb[27].mxu1 }
 0x7f1   : > { %v1215_v36 = vsub.f32 %v1211_v34, %v1893_v19  ;;  %v1216_v37 = vmul.f32 %v1214_v33, %v1214_v33 }
 0x7f3   : > { %v1217_v11 = vmul.f32 %v1215_v36, %v1215_v36 }
 0x7f5   : > { %v1567_v38 = vpack.c.bf16 %v1217_v11, %v1216_v37 }
 0x7f7   : > { %1569 = vmatpush3.bf16.xpose.msk.msra.mxu0 %vm1568_vm6, %v1567_v38 }
 0x7fe   : > { %1564 = vmatmul.mubr.msk.f32.vlgmr.msra.gmra.mrb[8].mxu0 %vm1219_vm5, %v1218_v39 }
 0x8d1   : > { %v1295_v8 = vpop.f32.mrb[8].mxu0 }
 0x8d2   : > { %1300 = vst.msk [vmem:[%s415_s14] sm:$0xf] %vm1299_vm7, %v1295_v8  ;;  %v1565_v19 = vpop.f32.mrb[9].mxu0 }
 0x8d3 PF: > { %s20_s30 = sadd.s32 1, %s1680_s30  }
 0x8d4   : > { %p17_p1 = scmp.ge.s32.totalorder %s20_s30, 4  }
 0x8d6   :  { %19 = sbr.rel (!%p17_p1) target bundleno = 1 (0x1), region = 103 }
 0x8dd   :  { %1320 = vsyncpa [#allocation3], 1 }
 0x8de   :  { %1322 = vsyncpa [#allocation3 + $0x1], 1 }

</bundles_post_ra>
